<compile_context>
chip_gen: v7x
topology: tpu7x:2x2x1
jax: 0.10.0
libtpu: 0.0.40
codegen_flags: <defaults>
</compile_context>

<pallas_src>
import functools

import jax
import jax.numpy as jnp
from jax.experimental import pallas as pl
from jax.experimental.pallas import tpu as pltpu

_LANE = 128
_MAX_BATCH_BLOCK = 1024


def _round_up(x, m):
    return ((x + m - 1) // m) * m


def _pick_batch_block(batch):
    # Small batches: one block (block == full dim, always a legal block shape).
    # Large batches: cap at 1024 rows (multiple of 8); pl.cdiv grid handles a
    # partial final block.  Keeps double-buffered x/out tiles far under the
    # scoped VMEM limit on every generation.
    if batch <= _MAX_BATCH_BLOCK:
        return batch
    return _MAX_BATCH_BLOCK


# -----------------------------------------------------------------------------
# Fused kernel: one grid step = one batch tile, ALL task heads.
# -----------------------------------------------------------------------------
def _fused_mlp_kernel(h1p, h2p, op, x_ref, w1_ref, w2_ref, w3_ref, b_ref,
                      out_ref):
    x = x_ref[...].astype(jnp.bfloat16)                    # [bt, D]
    b = b_ref[...]                                         # [3, P] f32

    # Layer 1: Linear -> ReLU   (Dropout = identity at inference)
    h1 = jnp.dot(x, w1_ref[...], preferred_element_type=jnp.float32)
    h1 = jnp.maximum(h1 + b[0:1, :h1p], 0.0)               # [bt, H1p]

    # Layer 2: Linear -> ReLU
    h2 = jnp.dot(h1.astype(jnp.bfloat16), w2_ref[...],
                 preferred_element_type=jnp.float32)
    h2 = jnp.maximum(h2 + b[1:2, :h2p], 0.0)               # [bt, H2p]

    # Final Linear (no activation), lane-dense padded output slab.
    out = jnp.dot(h2.astype(jnp.bfloat16), w3_ref[...],
                  preferred_element_type=jnp.float32)
    out_ref[...] = (out + b[2:3, :op]).astype(out_ref.dtype)


def fused_multihead_forward(x, fused):
    """x: [B, D] f32; fused: (W1, W2, W3, bias) block-diagonal fused params.

    Returns the padded output slab [B, out_pad] (f32); per-head lanes are
    sliced out in the thin JAX wrapper.
    """
    w1, w2, w3, bias = fused
    batch, d_in = x.shape
    h1p = w1.shape[1]
    h2p = w2.shape[1]
    op = w3.shape[1]
    bias_p = bias.shape[1]

    bt = _pick_batch_block(batch)
    grid = (pl.cdiv(batch, bt),)

    kernel = functools.partial(_fused_mlp_kernel, h1p, h2p, op)

    return pl.pallas_call(
        kernel,
        out_shape=jax.ShapeDtypeStruct((batch, op), jnp.float32),
        grid_spec=pltpu.PrefetchScalarGridSpec(
            num_scalar_prefetch=0,
            grid=grid,
            in_specs=[
                pl.BlockSpec((bt, d_in), lambda b: (b, 0)),
                # Weight / bias block indices are constant across the batch
                # grid axis -> fetched once, reused for every batch tile.
                pl.BlockSpec((d_in, h1p), lambda b: (0, 0)),
                pl.BlockSpec((h1p, h2p), lambda b: (0, 0)),
                pl.BlockSpec((h2p, op), lambda b: (0, 0)),
                pl.BlockSpec((3, bias_p), lambda b: (0, 0)),
            ],
            out_specs=pl.BlockSpec((bt, op), lambda b: (b, 0)),
        ),
        compiler_params=pltpu.CompilerParams(
            dimension_semantics=("parallel",)),
    )(x, w1, w2, w3, bias)


# -----------------------------------------------------------------------------
# Parameter construction (mirrors MLPMultiHead.__init__ shapes, deterministic).
# -----------------------------------------------------------------------------
def _kaiming_normal(key, fan_in, shape, nonlinearity="relu"):
    gain = jnp.sqrt(2.0) if nonlinearity == "relu" else 1.0
    std = gain / jnp.sqrt(float(fan_in))
    return std * jax.random.normal(key, shape, dtype=jnp.float32)


def build_mlp_multihead_params(key, input_dim, output_dims, layers="64-32"):
    """Per-task unpadded f32 params.  Weights stored as [in, out] (weight.T)."""
    hidden = [int(u) for u in layers.split("-")] if layers else []
    # TODO(synk): the fused kernel assumes exactly two hidden layers (module
    # default layers="64-32"); the layers='' single-linear variant is not
    # wired into the fused kernel.
    params = {}
    for task_name, out_dim in output_dims.items():
        key, *subkeys = jax.random.split(key, len(hidden) + 2)
        dims = [input_dim] + hidden + [out_dim]
        task_params = []
        for li, (d_in, d_out) in enumerate(zip(dims[:-1], dims[1:])):
            is_final = li == len(dims) - 2
            nl = "linear" if is_final else "relu"
            w = _kaiming_normal(subkeys[li], d_in, (d_in, d_out), nl)
            b = jnp.zeros((d_out,), dtype=jnp.float32)
            task_params.extend([w, b])
        params[task_name] = tuple(task_params)
    return params


def fuse_block_diagonal_params(params, output_dims, input_dim):
    """Fold all task heads into one set of fused (block-diagonal) weights.

    W1 of every head is concatenated along the output dim; W2 / W3 are
    block-diagonal, so three matmuls compute every head at the cost of ONE
    padded head in the previous design.  Zero padding is exact: zero weights
    + zero bias stay zero through ReLU and contribute nothing downstream;
    padded output lanes are sliced away in the wrapper.

    Weights are stored bf16 (halves weight DMA, MXU-native on all generations)
    while accumulation stays f32 in-kernel.  Biases are packed into one
    (3, P) f32 array to cut small-DMA descriptor count per grid step.
    """
    names = tuple(output_dims.keys())
    h1_sizes = [params[n][0].shape[1] for n in names]
    h2_sizes = [params[n][2].shape[1] for n in names]
    out_sizes = [output_dims[n] for n in names]

    h1p = _round_up(sum(h1_sizes), _LANE)
    h2p = _round_up(sum(h2_sizes), _LANE)
    op = _round_up(sum(out_sizes), _LANE)

    w1_f = jnp.zeros((input_dim, h1p), jnp.float32)
    w2_f = jnp.zeros((h1p, h2p), jnp.float32)
    w3_f = jnp.zeros((h2p, op), jnp.float32)
    b1_f = jnp.zeros((h1p,), jnp.float32)
    b2_f = jnp.zeros((h2p,), jnp.float32)
    b3_f = jnp.zeros((op,), jnp.float32)

    meta = []
    o1 = o2 = o3 = 0
    for name, s1, s2, so in zip(names, h1_sizes, h2_sizes, out_sizes):
        w1, b1, w2, b2, w3, b3 = params[name]
        w1_f = w1_f.at[:, o1:o1 + s1].set(w1)
        b1_f = b1_f.at[o1:o1 + s1].set(b1)
        w2_f = w2_f.at[o1:o1 + s1, o2:o2 + s2].set(w2)
        b2_f = b2_f.at[o2:o2 + s2].set(b2)
        w3_f = w3_f.at[o2:o2 + s2, o3:o3 + so].set(w3)
        b3_f = b3_f.at[o3:o3 + so].set(b3)
        meta.append((name, o3, so))
        o1 += s1
        o2 += s2
        o3 += so

    bias_p = max(h1p, h2p, op)
    bias = jnp.zeros((3, bias_p), jnp.float32)
    bias = bias.at[0, :h1p].set(b1_f)
    bias = bias.at[1, :h2p].set(b2_f)
    bias = bias.at[2, :op].set(b3_f)

    fused = (w1_f.astype(jnp.bfloat16), w2_f.astype(jnp.bfloat16),
             w3_f.astype(jnp.bfloat16), bias)
    return fused, tuple(meta)


# -----------------------------------------------------------------------------
# Forward wrapper: one fused kernel launch, then cheap per-task lane slicing.
# -----------------------------------------------------------------------------
@functools.partial(jax.jit, static_argnames=("meta",))
def mlp_multihead_forward(x, fused, meta):
    """meta: static tuple of (task_name, lane_offset, out_dim) in head order."""
    slab = fused_multihead_forward(x, fused)          # [B, out_pad] f32
    preds = {}
    for name, off, dim in meta:
        p = slab[:, off:off + dim]
        preds[name] = p[:, 0] if dim == 1 else p      # squeeze(-1) if dim == 1
    return preds


# -----------------------------------------------------------------------------
# Main
# -----------------------------------------------------------------------------
if __name__ == "__main__":
    key = jax.random.PRNGKey(0)
    k_x, k_p = jax.random.split(key)

    batch = 2
    input_dim = 32
    output_dims = {"y60_duo": 1, "y30_class": 3}

    x = jax.random.normal(k_x, (batch, input_dim), dtype=jnp.float32)
    raw_params = build_mlp_multihead_params(k_p, input_dim, output_dims,
                                            layers="64-32")
    fused, meta = fuse_block_diagonal_params(raw_params, output_dims, input_dim)

    preds = mlp_multihead_forward(x, fused, meta)
    preds = jax.tree_util.tree_map(jax.block_until_ready, preds)

    # Shapes match the PyTorch forward (squeeze(-1) when out_dim == 1).
    assert preds["y60_duo"].shape == (batch,)
    assert preds["y30_class"].shape == (batch, 3)

    # Pure-JAX reference mirroring the kernel's bf16-input / f32-accumulate math.
    def ref_head(x, p):
        w1, b1, w2, b2, w3, b3 = p
        bf = jnp.bfloat16
        h = jnp.dot(x.astype(bf), w1.astype(bf),
                    preferred_element_type=jnp.float32) + b1
        h = jnp.maximum(h, 0.0)
        h = jnp.dot(h.astype(bf), w2.astype(bf),
                    preferred_element_type=jnp.float32) + b2
        h = jnp.maximum(h, 0.0)
        return jnp.dot(h.astype(bf), w3.astype(bf),
                       preferred_element_type=jnp.float32) + b3

    for name, p in raw_params.items():
        ref = ref_head(x, p)
        if ref.shape[-1] == 1:
            ref = jnp.squeeze(ref, axis=-1)
        assert jnp.allclose(preds[name], ref, atol=2e-3, rtol=2e-3), name

    print("KERNEL_OK")
</pallas_src>

<mosaic_0001>
module attributes {stable_mosaic.version = 11 : i64} {
  func.func @_fused_mlp_kernel(%arg0: i32, %arg1: memref<2x32xf32, #tpu.memory_space<vmem>>, %arg2: memref<32x128xbf16, #tpu.memory_space<vmem>>, %arg3: memref<128x128xbf16, #tpu.memory_space<vmem>>, %arg4: memref<128x128xbf16, #tpu.memory_space<vmem>>, %arg5: memref<3x128xf32, #tpu.memory_space<vmem>>, %arg6: memref<2x128xf32, #tpu.memory_space<vmem>>) attributes {dimension_semantics = [#tpu.dimension_semantics<parallel>], iteration_bounds = array<i64: 1>, scalar_prefetch = 0 : i64, scratch_operands = 0 : i64, tpu.core_type = #tpu.core_type<tc>, window_params = [{transform_indices = @transform_0, window_bounds = array<i64: 2, 32>}, {pipeline_mode = #tpu.pipeline_mode<synchronous>, transform_indices = @transform_1, window_bounds = array<i64: 32, 128>}, {pipeline_mode = #tpu.pipeline_mode<synchronous>, transform_indices = @transform_2, window_bounds = array<i64: 128, 128>}, {pipeline_mode = #tpu.pipeline_mode<synchronous>, transform_indices = @transform_3, window_bounds = array<i64: 128, 128>}, {pipeline_mode = #tpu.pipeline_mode<synchronous>, transform_indices = @transform_4, window_bounds = array<i64: 3, 128>}, {transform_indices = @transform_5, window_bounds = array<i64: 2, 128>}]} {
    %c0 = arith.constant 0 : index
    %c0_0 = arith.constant 0 : index
    %0 = vector.load %arg1[%c0, %c0_0] : memref<2x32xf32, #tpu.memory_space<vmem>>, vector<2x32xf32>
    %1 = arith.truncf %0 : vector<2x32xf32> to vector<2x32xbf16>
    %c0_1 = arith.constant 0 : index
    %c0_2 = arith.constant 0 : index
    %2 = vector.load %arg5[%c0_1, %c0_2] : memref<3x128xf32, #tpu.memory_space<vmem>>, vector<3x128xf32>
    %c0_3 = arith.constant 0 : index
    %c0_4 = arith.constant 0 : index
    %3 = vector.load %arg2[%c0_3, %c0_4] : memref<32x128xbf16, #tpu.memory_space<vmem>>, vector<32x128xbf16>
    %cst = arith.constant dense<0.000000e+00> : vector<2x128xf32>
    %4 = tpu.matmul %1, %3, %cst {dimension_numbers = #tpu.dot_dimension_numbers<[1], [0], [0], [1], [0, 0, 1, 1], [], []>} : vector<2x32xbf16>, vector<32x128xbf16>, vector<2x128xf32> -> vector<2x128xf32>
    %5 = vector.extract_strided_slice %2 {offsets = [0, 0], sizes = [1, 128], strides = [1, 1]} : vector<3x128xf32> to vector<1x128xf32>
    %6 = vector.broadcast %5 : vector<1x128xf32> to vector<2x128xf32>
    %7 = arith.addf %4, %6 : vector<2x128xf32>
    %cst_5 = arith.constant 0.000000e+00 : f32
    %8 = vector.broadcast %cst_5 : f32 to vector<2x128xf32>
    %9 = arith.maximumf %7, %8 : vector<2x128xf32>
    %10 = arith.truncf %9 : vector<2x128xf32> to vector<2x128xbf16>
    %c0_6 = arith.constant 0 : index
    %c0_7 = arith.constant 0 : index
    %11 = vector.load %arg3[%c0_6, %c0_7] : memref<128x128xbf16, #tpu.memory_space<vmem>>, vector<128x128xbf16>
    %cst_8 = arith.constant dense<0.000000e+00> : vector<2x128xf32>
    %12 = tpu.matmul %10, %11, %cst_8 {dimension_numbers = #tpu.dot_dimension_numbers<[1], [0], [0], [1], [0, 0, 1, 1], [], []>} : vector<2x128xbf16>, vector<128x128xbf16>, vector<2x128xf32> -> vector<2x128xf32>
    %13 = vector.extract_strided_slice %2 {offsets = [1, 0], sizes = [1, 128], strides = [1, 1]} : vector<3x128xf32> to vector<1x128xf32>
    %14 = vector.broadcast %13 : vector<1x128xf32> to vector<2x128xf32>
    %15 = arith.addf %12, %14 : vector<2x128xf32>
    %cst_9 = arith.constant 0.000000e+00 : f32
    %16 = vector.broadcast %cst_9 : f32 to vector<2x128xf32>
    %17 = arith.maximumf %15, %16 : vector<2x128xf32>
    %18 = arith.truncf %17 : vector<2x128xf32> to vector<2x128xbf16>
    %c0_10 = arith.constant 0 : index
    %c0_11 = arith.constant 0 : index
    %19 = vector.load %arg4[%c0_10, %c0_11] : memref<128x128xbf16, #tpu.memory_space<vmem>>, vector<128x128xbf16>
    %cst_12 = arith.constant dense<0.000000e+00> : vector<2x128xf32>
    %20 = tpu.matmul %18, %19, %cst_12 {dimension_numbers = #tpu.dot_dimension_numbers<[1], [0], [0], [1], [0, 0, 1, 1], [], []>} : vector<2x128xbf16>, vector<128x128xbf16>, vector<2x128xf32> -> vector<2x128xf32>
    %21 = vector.extract_strided_slice %2 {offsets = [2, 0], sizes = [1, 128], strides = [1, 1]} : vector<3x128xf32> to vector<1x128xf32>
    %22 = vector.broadcast %21 : vector<1x128xf32> to vector<2x128xf32>
    %23 = arith.addf %20, %22 : vector<2x128xf32>
    %c0_13 = arith.constant 0 : index
    %c0_14 = arith.constant 0 : index
    %24 = vector.load %arg6[%c0_13, %c0_14] : memref<2x128xf32, #tpu.memory_space<vmem>>, vector<2x128xf32>
    tpu.vector_store %arg6[%c0_13, %c0_14], %23 {strides = array<i32>} : memref<2x128xf32, #tpu.memory_space<vmem>>, vector<2x128xf32>,
    return
  }
  func.func @transform_0(%arg0: i32) -> (i32, i32) {
    %c0_i32 = arith.constant 0 : i32
    %c0_i32_0 = arith.constant 0 : i32
    return %arg0, %c0_i32 : i32, i32
  }
  func.func @transform_1(%arg0: i32) -> (i32, i32) {
    %c0_i32 = arith.constant 0 : i32
    %c0_i32_0 = arith.constant 0 : i32
    %c0_i32_1 = arith.constant 0 : i32
    return %c0_i32, %c0_i32_0 : i32, i32
  }
  func.func @transform_2(%arg0: i32) -> (i32, i32) {
    %c0_i32 = arith.constant 0 : i32
    %c0_i32_0 = arith.constant 0 : i32
    %c0_i32_1 = arith.constant 0 : i32
    return %c0_i32, %c0_i32_0 : i32, i32
  }
  func.func @transform_3(%arg0: i32) -> (i32, i32) {
    %c0_i32 = arith.constant 0 : i32
    %c0_i32_0 = arith.constant 0 : i32
    %c0_i32_1 = arith.constant 0 : i32
    return %c0_i32, %c0_i32_0 : i32, i32
  }
  func.func @transform_4(%arg0: i32) -> (i32, i32) {
    %c0_i32 = arith.constant 0 : i32
    %c0_i32_0 = arith.constant 0 : i32
    %c0_i32_1 = arith.constant 0 : i32
    return %c0_i32, %c0_i32_0 : i32, i32
  }
  func.func @transform_5(%arg0: i32) -> (i32, i32) {
    %c0_i32 = arith.constant 0 : i32
    %c0_i32_0 = arith.constant 0 : i32
    return %arg0, %c0_i32 : i32, i32
  }
}

</mosaic_0001>

<bundles_post_ra>
// kernel: mlp_multihead_forward.1
= control target key start
LH: loop header
LB: loop body
LE: loop exit
PB: predicated region body
PF: predicated region fallthrough
CT: control target
= control target key end

     0   :  { %10 = vsyncpa [#allocation3], 0  ;;  %s702_s0 = inlined_call_operand.hbm [shape: f32[2,32], index: 0, kind: input, shape index: {}]   ;;  %s703_s1 = inlined_call_operand.hbm [shape: bf16[32,128], index: 1, kind: input, shape index: {}]   ;;  %s704_s2 = inlined_call_operand.hbm [shape: bf16[128,128], index: 2, kind: input, shape index: {}]   ;;  %s705_s3 = inlined_call_operand.hbm [shape: bf16[128,128], index: 3, kind: input, shape index: {}]   ;;  %s706_s4 = inlined_call_operand.vmem [shape: f32[3,128], index: 4, kind: input, shape index: {}]   ;;  %s707_s5 = inlined_call_operand.vmem [shape: f32[2,128], index: 5, kind: output, shape index: {}]  }
   0x1   :  { %11 = vsyncpa [#allocation5], 0 }
   0x2   :  { %12 = vsyncpa [#allocation8], 0  ;;  %s577_s18 = smov [#allocation4]   ;;  %s483_s22 = scalar_lea.hbm %s703_s1, 256 }
   0x3   :  { %s28_s19 = sshll.u32 %s577_s18, 4  ;;  %p484_p0 = scmp.ne.s32.totalorder %s703_s1, %s483_s22  ;;  %s29_s19 = int_to_ptr.vmem [resolvable:$true] %s28_s19 }
   0x4   :  { %p487_p1 = scmp.lt.u32.totalorder %s483_s22, %s703_s1 }
   0x6   :  { %p489_p2 = pnand %p487_p1, %p484_p0 }
   0x8   :  { %492 = shalt.err (!%p489_p2)
}
   0x9   :  { %s493_s27 = scalar_lea.vmem %s29_s19, 256  ;;  %p498_p4 = scmp.lt.s32.totalorder %s29_s19, %s29_s19 }
   0xa   :  { %p494_p3 = scmp.ne.s32.totalorder %s29_s19, %s493_s27  ;;  %p499_p5 = scmp.lt.s32.totalorder %s493_s27, %s493_s27 }
   0xc   :  { %p500_p6 = por %p499_p5, %p498_p4 }
   0xe   :  { %p501_p7 = pnand %p500_p6, %p494_p3 }
  0x10   :  { %504 = shalt.err (!%p501_p7)
}
  0x11   :  { %s578_s28 = smov 64   ;;  %s579_s29 = smov 4  }
  0x12   :  { %34 = dma.hbm_to_vmem [thread:$0]  %s703_s1, 256, %s29_s19, [#allocation5], %s578_s28, %s578_s28, %s579_s29  }
  0x13   :  { %s580_s7 = smov [#allocation2]   ;;  %s581_s9 = smov [#allocation6]  }
  0x14   :  { %s19_s8 = sshll.u32 %s580_s7, 4  ;;  %s40_s10 = sshll.u32 %s581_s9, 4  ;;  %s20_s8 = int_to_ptr.vmem [resolvable:$true] %s19_s8  ;;  %s41_s10 = int_to_ptr.vmem [resolvable:$true] %s40_s10 }
  0x15   :  { %s505_s13 = scalar_lea.hbm %s702_s0, 32 }
  0x16   :  { %p506_p8 = scmp.ne.s32.totalorder %s702_s0, %s505_s13  ;;  %p509_p9 = scmp.lt.u32.totalorder %s505_s13, %s702_s0 }
  0x18   :  { %p511_p10 = pnand %p509_p9, %p506_p8 }
  0x1a   :  { %514 = shalt.err (!%p511_p10)
}
  0x1b   :  { %s515_s1 = scalar_lea.vmem %s20_s8, 32  ;;  %p520_p12 = scmp.lt.s32.totalorder %s20_s8, %s20_s8 }
  0x1c   :  { %p516_p11 = scmp.ne.s32.totalorder %s20_s8, %s515_s1  ;;  %p521_p13 = scmp.lt.s32.totalorder %s515_s1, %s515_s1 }
  0x1e   :  { %p522_p0 = por %p521_p13, %p520_p12 }
  0x20   :  { %p523_p1 = pnand %p522_p0, %p516_p11 }
  0x22   :  { %526 = shalt.err (!%p523_p1)
}
  0x23   :  { %22 = dma.hbm_to_vmem [thread:$0]  %s702_s0, 32, %s20_s8, [#allocation3]  }
  0x24   :  { %s527_s22 = scalar_lea.hbm %s704_s2, 1024 }
  0x25   :  { %p528_p2 = scmp.ne.s32.totalorder %s704_s2, %s527_s22  ;;  %p531_p3 = scmp.lt.u32.totalorder %s527_s22, %s704_s2 }
  0x27   :  { %p533_p4 = pnand %p531_p3, %p528_p2 }
  0x29   :  { %536 = shalt.err (!%p533_p4)
}
  0x2a   :  { %s537_s27 = scalar_lea.vmem %s41_s10, 1024  ;;  %p542_p6 = scmp.lt.s32.totalorder %s41_s10, %s41_s10 }
  0x2b   :  { %p538_p5 = scmp.ne.s32.totalorder %s41_s10, %s537_s27  ;;  %p543_p7 = scmp.lt.s32.totalorder %s537_s27, %s537_s27 }
  0x2d   :  { %p544_p8 = por %p543_p7, %p542_p6 }
  0x2f   :  { %p545_p9 = pnand %p544_p8, %p538_p5 }
  0x31   :  { %548 = shalt.err (!%p545_p9)
}
  0x32   :  { %46 = dma.hbm_to_vmem [thread:$0]  %s704_s2, 1024, %s41_s10, [#allocation5], %s578_s28, %s578_s28, %s579_s29  }
  0x33   :  { %s582_s6 = smov [#allocation7]   ;;  %s549_s11 = scalar_lea.hbm %s705_s3, 1024 }
  0x34   :  { %s52_s7 = sshll.u32 %s582_s6, 4  ;;  %p550_p10 = scmp.ne.s32.totalorder %s705_s3, %s549_s11  ;;  %s53_s7 = int_to_ptr.vmem [resolvable:$true] %s52_s7 }
  0x35   :  { %p553_p11 = scmp.lt.u32.totalorder %s549_s11, %s705_s3 }
  0x37   :  { %p555_p12 = pnand %p553_p11, %p550_p10 }
  0x39   :  { %558 = shalt.err (!%p555_p12)
}
  0x3a   :  { %s559_s16 = scalar_lea.vmem %s53_s7, 1024  ;;  %p564_p0 = scmp.lt.s32.totalorder %s53_s7, %s53_s7 }
  0x3b   :  { %p560_p13 = scmp.ne.s32.totalorder %s53_s7, %s559_s16  ;;  %p565_p1 = scmp.lt.s32.totalorder %s559_s16, %s559_s16 }
  0x3d   :  { %p566_p2 = por %p565_p1, %p564_p0 }
  0x3f   :  { %p567_p3 = pnand %p566_p2, %p560_p13 }
  0x41   :  { %570 = shalt.err (!%p567_p3)
}
  0x42   :  { %58 = dma.hbm_to_vmem [thread:$0]  %s705_s3, 1024, %s53_s7, [#allocation8], %s578_s28, %s578_s28, %s579_s29  }
  0x43   :  { %571 = dma.done.wait [#allocation3], 32  }
  0x44   :  { %572 = vsyncadd [#allocation3], 4294967264 }
  0x45   :  { %573 = dma.done.wait [#allocation5], 1280  }
  0x46   :  { %574 = vsyncadd [#allocation5], 4294966016 }
  0x47   :  { %575 = dma.done.wait [#allocation8], 1024  }
  0x48   :  { %576 = vsyncadd [#allocation8], 4294966272  ;;  %v583_v0 = vmov 0.0   ;;  %vm584_vm0 = vmmov 0   ;;  %v465_v1 = vld [vmem:[#allocation4] sm:$0xff]   ;;  %v466_v2 = vld [vmem:[#allocation4 + $0x8] sm:$0xff]   ;;  %v81_v19 = vlaneseq }
  0x49   :  { %409 = vmatprep.subr.bf16.mxu0 %v583_v0  ;;  %413 = vmatprep.mubr.msk.bf16.mxu0 %vm584_vm0, %v583_v0  ;;  %v74_v3 = vld [vmem:[#allocation2] sm:$0x3]  ;;  %v467_v4 = vld [vmem:[#allocation6] sm:$0xff]   ;;  %vm97_vm1 = vcmask 261120   ;;  %v469_v7 = vld [vmem:[#allocation6 + $0x10] sm:$0xff]  }
  0x4a   :  { %417 = vmatprep.subr.bf16.mxu1 %v583_v0  ;;  %433 = vmatprep.mubr.msk.bf16.mxu1 %vm584_vm0, %v583_v0  ;;  %v75_v5 = vpack.c.bf16 %v74_v3, %v74_v3  ;;  %v468_v6 = vld [vmem:[#allocation6 + $0x8] sm:$0xff]   ;;  %v470_v8 = vld [vmem:[#allocation6 + $0x18] sm:$0xff]   ;;  %v471_v9 = vld [vmem:[#allocation6 + $0x20] sm:$0xff]   ;;  %v82_v20 = vshrl.u32 %v81_v19, 7 }
  0x4b   :  { %410 = vmatpush3.bf16.msra.mxu0 %v465_v1  ;;  %418 = vmatpush3.bf16.msra.mxu1 %v467_v4  ;;  %v472_v10 = vld [vmem:[#allocation6 + $0x28] sm:$0xff]   ;;  %v473_v11 = vld [vmem:[#allocation6 + $0x30] sm:$0xff]   ;;  %v474_v12 = vld [vmem:[#allocation6 + $0x38] sm:$0xff]  }
  0x4c   :  { %411 = vmatprep.subr.bf16.mxu0 %v583_v0  ;;  %419 = vmatprep.subr.bf16.mxu1 %v583_v0  ;;  %v475_v13 = vld [vmem:[#allocation7] sm:$0xff]   ;;  %v476_v14 = vld [vmem:[#allocation7 + $0x8] sm:$0xff]   ;;  %v477_v15 = vld [vmem:[#allocation7 + $0x10] sm:$0xff]   ;;  %v83_v21 = vsub.s32 0, %v82_v20  ;;  %v161_v33 = vsub.s32 1, %v82_v20  ;;  %v271_v42 = vsub.s32 2, %v82_v20 }
  0x4d   :  { %v478_v16 = vld [vmem:[#allocation7 + $0x18] sm:$0xff]   ;;  %v479_v17 = vld [vmem:[#allocation7 + $0x20] sm:$0xff]   ;;  %v480_v18 = vld [vmem:[#allocation7 + $0x28] sm:$0xff]  }
  0x4e   :  { %v76_v22 = vld [vmem:[%s706_s4] sm:$0x7]  ;;  %v481_v31 = vld [vmem:[#allocation7 + $0x30] sm:$0xff]  }
  0x4f   :  { %412 = vmatpush3.bf16.msra.mxu0 %v466_v2  ;;  %420 = vmatpush3.bf16.msra.mxu1 %v468_v6  ;;  %v84_v23 = vrot.slane %v76_v22, %v83_v21  ;;  %v482_v32 = vld [vmem:[#allocation7 + $0x38] sm:$0xff]   ;;  %v162_v34 = vrot.slane %v76_v22, %v161_v33  ;;  %v272_v43 = vrot.slane %v76_v22, %v271_v42 }
  0x50   :  { %437 = vmatprep.subr.bf16.mxu0 %v583_v0  ;;  %421 = vmatprep.subr.bf16.mxu1 %v583_v0 }
  0x52   :  { %414 = vmatmul.mubr.msk.bf16.vlgmr.msra.gmra.mrb[0].mxu0 %vm97_vm1, %v75_v5 }
  0x53   :  { %453 = vmatprep.mubr.msk.bf16.mxu0 %vm584_vm0, %v583_v0  ;;  %422 = vmatpush3.bf16.msra.mxu1 %v469_v7 }
  0x54   :  { %423 = vmatprep.subr.bf16.mxu1 %v583_v0  ;;  %438 = vmatpush3.bf16.msra.mxu0 %v475_v13 }
  0x55   :  { %439 = vmatprep.subr.bf16.mxu0 %v583_v0 }
  0x57   :  { %424 = vmatpush3.bf16.msra.mxu1 %v470_v8 }
  0x58   :  { %425 = vmatprep.subr.bf16.mxu1 %v583_v0  ;;  %440 = vmatpush3.bf16.msra.mxu0 %v476_v14 }
  0x59   :  { %441 = vmatprep.subr.bf16.mxu0 %v583_v0 }
  0x5b   :  { %426 = vmatpush3.bf16.msra.mxu1 %v471_v9 }
  0x5c   :  { %427 = vmatprep.subr.bf16.mxu1 %v583_v0  ;;  %442 = vmatpush3.bf16.msra.mxu0 %v477_v15 }
  0x5d   :  { %443 = vmatprep.subr.bf16.mxu0 %v583_v0 }
  0x5f   :  { %428 = vmatpush3.bf16.msra.mxu1 %v472_v10 }
  0x60   :  { %429 = vmatprep.subr.bf16.mxu1 %v583_v0  ;;  %444 = vmatpush3.bf16.msra.mxu0 %v478_v16 }
  0x61   :  { %445 = vmatprep.subr.bf16.mxu0 %v583_v0 }
  0x63   :  { %430 = vmatpush3.bf16.msra.mxu1 %v473_v11 }
  0x64   :  { %431 = vmatprep.subr.bf16.mxu1 %v583_v0  ;;  %446 = vmatpush3.bf16.msra.mxu0 %v479_v17 }
  0x65   :  { %447 = vmatprep.subr.bf16.mxu0 %v583_v0 }
  0x67   :  { %432 = vmatpush3.bf16.msra.mxu1 %v474_v12 }
  0x68   :  { %448 = vmatpush3.bf16.msra.mxu0 %v480_v18 }
  0x69   :  { %449 = vmatprep.subr.bf16.mxu0 %v583_v0 }
  0x6c   :  { %450 = vmatpush3.bf16.msra.mxu0 %v481_v31 }
  0x6d   :  { %451 = vmatprep.subr.bf16.mxu0 %v583_v0 }
  0x70   :  { %452 = vmatpush3.bf16.msra.mxu0 %v482_v32 }
 0x125   :  { %v135_v24 = vpop.f32.mrb[0].mxu0 }
 0x126   :  { %v136_v25 = vadd.f32 %v135_v24, %v84_v23  ;;  %v415_v26 = vpop.f32.mrb[1].mxu0 }
 0x127   :  { %v138_v27 = vpop.f32.mrb[2].mxu0 }
 0x128   :  { %v141_v28 = vmax.f32 %v136_v25, 0.0  ;;  %v416_v29 = vpop.f32.mrb[3].mxu0 }
 0x12a   :  { %v142_v30 = vpack.c.bf16 %v141_v28, %v141_v28 }
 0x12c   :  { %434 = vmatmul.mubr.bf16.vlgmr.msra.gmra.mrb[0].mxu1 %v142_v30 }
 0x1ff   :  { %v245_v35 = vpop.f32.mrb[0].mxu1 }
 0x200   :  { %v246_v36 = vadd.f32 %v245_v35, %v162_v34  ;;  %v435_v37 = vpop.f32.mrb[1].mxu1 }
 0x201   :  { %v248_v38 = vpop.f32.mrb[2].mxu1 }
 0x202   :  { %v251_v39 = vmax.f32 %v246_v36, 0.0  ;;  %v436_v40 = vpop.f32.mrb[3].mxu1 }
 0x204   :  { %v252_v41 = vpack.c.bf16 %v251_v39, %v251_v39 }
 0x206   :  { %454 = vmatmul.mubr.bf16.vlgmr.msra.gmra.mrb[4].mxu0 %v252_v41 }
 0x2d9   :  { %v355_v44 = vpop.f32.mrb[4].mxu0 }
 0x2da   :  { %v356_v45 = vadd.f32 %v355_v44, %v272_v43  ;;  %v455_v46 = vpop.f32.mrb[5].mxu0 }
 0x2db   :  { %v358_v47 = vpop.f32.mrb[6].mxu0 }
 0x2dc   :  { %361 = vst [vmem:[%s707_s5] sm:$0x3] %v356_v45  ;;  %v456_v48 = vpop.f32.mrb[7].mxu0 }
 0x2dd   :  { %366 = vsyncpa [#allocation3], 1 }
 0x2de   :  { %367 = vsyncpa [#allocation5], 1 }
 0x2df   :  { %368 = vsyncpa [#allocation8], 1 }

</bundles_post_ra>
